<compile_context>
chip_gen: v7x
topology: tpu7x:2x2x1
jax: 0.10.0
libtpu: 0.0.40
codegen_flags: <defaults>
</compile_context>

<pallas_src>
import functools
import math

import jax
import jax.numpy as jnp
from jax.experimental import pallas as pl
from jax.experimental.pallas import tpu as pltpu


def _round_up(x, m):
    return ((x + m - 1) // m) * m


# ----------------------------------------------------------------------------
# Pallas kernel: fused shift-and-matmul conv + bias + LeakyReLU(0.2)
# ----------------------------------------------------------------------------
def _fused_conv_lrelu_kernel(x_ref, w_ref, b_ref, o_ref, *, tap_offsets, activate):
    # x_ref : (Cin_p, Lin)          bf16  flattened zero-padded image (one batch elem)
    # w_ref : (KH*KW, Cout, Cin_p)  bf16  spectrally-normalised weight, tap-major (resident)
    # b_ref : (Cout, 1)             f32   bias (resident)
    # o_ref : (Cout, Lwide)         f32   lane-dense "wide" conv output
    lwide = o_ref.shape[-1]
    x = x_ref[...]                                   # single VMEM load
    acc = jnp.zeros(o_ref.shape, jnp.float32)
    for r, d in enumerate(tap_offsets):              # static unroll over KH*KW taps
        acc = acc + jnp.dot(w_ref[r], x[:, d:d + lwide],
                            preferred_element_type=jnp.float32)
    acc = acc + b_ref[...]                           # f32 bias add (broadcast over lanes)
    if activate:
        acc = jnp.maximum(acc, 0.2 * acc)            # LeakyReLU(0.2) == max(x, 0.2x)
    o_ref[...] = acc


def _fused_conv_lrelu(x_flat, w_taps, bias, *, tap_offsets, lwide, activate):
    """x_flat: (N, Cin_p, Lin) bf16, w_taps: (T, Cout, Cin_p) bf16, bias: (Cout, 1) f32
       -> 'wide' conv output (N, Cout, Lwide) f32."""
    N, cin_p, lin = x_flat.shape
    T, cout, _ = w_taps.shape
    assert lin % 128 == 0 and lwide % 128 == 0
    assert lin >= lwide + max(tap_offsets)

    kernel = functools.partial(_fused_conv_lrelu_kernel,
                               tap_offsets=tap_offsets, activate=activate)
    cost = pl.CostEstimate(
        flops=2 * N * cout * cin_p * T * lwide,
        transcendentals=0,
        bytes_accessed=x_flat.size * 2 + w_taps.size * 2 + bias.size * 4
        + N * cout * lwide * 4,
    )
    return pl.pallas_call(
        kernel,
        out_shape=jax.ShapeDtypeStruct((N, cout, lwide), jnp.float32),
        grid=(N,),
        in_specs=[
            pl.BlockSpec((None, cin_p, lin), lambda n: (n, 0, 0)),  # one image / step
            pl.BlockSpec((T, cout, cin_p), lambda n: (0, 0, 0)),    # weight (resident)
            pl.BlockSpec((cout, 1), lambda n: (0, 0)),              # bias   (resident)
        ],
        out_specs=pl.BlockSpec((None, cout, lwide), lambda n: (n, 0, 0)),
        compiler_params=pltpu.CompilerParams(
            dimension_semantics=("parallel",)),
        cost_estimate=cost,
    )(x_flat, w_taps, bias)


# ----------------------------------------------------------------------------
# Glue: spectral norm (one power iteration) + layout prep
# ----------------------------------------------------------------------------
def _l2_normalize(v, eps=1e-12):
    return v / jnp.maximum(jnp.linalg.norm(v), eps)


def spectral_normalize(weight, u):
    """Reproduces torch.nn.utils.spectral_norm forward (n_power_iterations=1).

    weight: (Cout, Cin, KH, KW), u: (Cout,)
    """
    cout = weight.shape[0]
    w_mat = weight.reshape(cout, -1)                       # (Cout, Cin*KH*KW)
    v = _l2_normalize(w_mat.T @ u)
    u_new = _l2_normalize(w_mat @ v)
    sigma = u_new @ (w_mat @ v)
    return weight / sigma
    # TODO(synk): torch updates the `u` buffer in place; the recomputed u is not
    # persisted here (forward output of a single call is identical).


def block_forward(x_nchw, weight, bias, u, *, stride, padding, activate=True):
    """Forward of Block. x_nchw: (N, Cin, H, W) f32 -> (N, Cout, OH, OW) f32."""
    w_sn = spectral_normalize(weight, u)                   # (Cout, Cin, KH, KW)
    Cout, Cin, KH, KW = w_sn.shape
    N, _, H, W = x_nchw.shape
    s = stride

    Hp, Wp = H + 2 * padding, W + 2 * padding
    OH = (Hp - KH) // s + 1
    OW = (Wp - KW) // s + 1

    # Sublane-friendly channel count (no-op at production channel counts).
    Cin_p = _round_up(max(Cin, 8), 8)

    # --- activation: bf16 up front, one pad pass, flatten padded spatial ----
    xb = x_nchw.astype(jnp.bfloat16)
    xb = jnp.pad(xb, ((0, 0), (0, Cin_p - Cin),
                      (padding, padding), (padding, padding)))
    x_flat = xb.reshape(N, Cin_p, Hp * Wp)

    # "Wide" output: flat position p = s*(oh*Wp + ow) of the padded grid holds
    # conv output (oh, ow); tap (kh, kw) reads flat offset p + kh*Wp + kw.
    d_max = (KH - 1) * Wp + (KW - 1)
    lwide = _round_up((OH * Wp - 1) * s + 1, 128)           # lane-dense extent
    lin = _round_up(max(lwide + d_max, Hp * Wp), 128)
    x_flat = jnp.pad(x_flat, ((0, 0), (0, 0), (0, lin - Hp * Wp)))

    # --- weight: tap-major (kh*KW + kw, Cout, Cin_p), bf16 ------------------
    w_p = jnp.pad(w_sn, ((0, 0), (0, Cin_p - Cin), (0, 0), (0, 0)))
    w_taps = jnp.transpose(w_p, (2, 3, 0, 1)).reshape(KH * KW, Cout, Cin_p)
    w_taps = w_taps.astype(jnp.bfloat16)
    tap_offsets = tuple(kh * Wp + kw for kh in range(KH) for kw in range(KW))

    out_wide = _fused_conv_lrelu(
        x_flat, w_taps, bias.reshape(Cout, 1).astype(jnp.float32),
        tap_offsets=tap_offsets, lwide=lwide, activate=activate)   # (N, Cout, Lwide)

    # Compaction: keep positions p = s*(oh*Wp + ow).  This single cheap pass
    # over the small f32 output replaces the 9x im2col HBM blow-up of v2.
    out_sub = out_wide[:, :, ::s] if s > 1 else out_wide
    y = out_sub[:, :, :OH * Wp].reshape(N, Cout, OH, Wp)[:, :, :, :OW]
    return y                                                # already NCHW


# ----------------------------------------------------------------------------
# main
# ----------------------------------------------------------------------------
if __name__ == "__main__":
    # Block(in_channels=4, out_channels=8, kernel_size=3, stride=1, padding=1)
    N, Cin, H, W = 2, 4, 16, 16
    Cout, K, STRIDE, PAD = 8, 3, 1, 1

    key = jax.random.PRNGKey(0)
    kx, kw, kb, ku = jax.random.split(key, 4)

    x = jax.random.normal(kx, (N, Cin, H, W), dtype=jnp.float32)

    # Deterministic parameter init (mimics Conv2d's kaiming_uniform / bias bounds)
    fan_in = Cin * K * K
    w_bound = math.sqrt(6.0 / ((1.0 + 5.0) * fan_in))      # kaiming_uniform(a=sqrt(5))
    weight = jax.random.uniform(kw, (Cout, Cin, K, K), jnp.float32,
                                minval=-w_bound, maxval=w_bound)
    b_bound = 1.0 / math.sqrt(fan_in)
    bias = jax.random.uniform(kb, (Cout,), jnp.float32,
                              minval=-b_bound, maxval=b_bound)
    u_vec = _l2_normalize(jax.random.normal(ku, (Cout,), jnp.float32))

    fwd = jax.jit(functools.partial(block_forward, stride=STRIDE, padding=PAD,
                                    activate=True))
    y = jax.block_until_ready(fwd(x, weight, bias, u_vec))

    # Cross-check against a plain-JAX reference using the same bf16-rounded
    # operands (Pallas path casts activations/weights to bf16, accumulates f32).
    w_sn = spectral_normalize(weight, u_vec)
    x_q = x.astype(jnp.bfloat16).astype(jnp.float32)
    w_q = w_sn.astype(jnp.bfloat16).astype(jnp.float32)
    ref = jax.lax.conv_general_dilated(
        x_q, w_q, window_strides=(STRIDE, STRIDE),
        padding=[(PAD, PAD), (PAD, PAD)],
        dimension_numbers=("NCHW", "OIHW", "NCHW"),
        precision=jax.lax.Precision.HIGHEST)
    ref = ref + bias.reshape(1, Cout, 1, 1)
    ref = jnp.maximum(ref, 0.2 * ref)

    assert y.shape == (N, Cout, H, W)
    err = float(jnp.max(jnp.abs(y - ref)))
    assert jnp.allclose(y, ref, atol=1e-2, rtol=1e-2), err

    print("KERNEL_OK")
</pallas_src>

<mosaic_0001>
module attributes {stable_mosaic.version = 11 : i64} {
  func.func @_fused_conv_lrelu_kernel(%arg0: i32, %arg1: memref<1x8x512xbf16, #tpu.memory_space<vmem>>, %arg2: memref<9x8x8xbf16, #tpu.memory_space<vmem>>, %arg3: memref<8x1xf32, #tpu.memory_space<vmem>>, %arg4: memref<1x8x384xf32, #tpu.memory_space<vmem>>) attributes {dimension_semantics = [#tpu.dimension_semantics<parallel>], iteration_bounds = array<i64: 2>, scalar_prefetch = 0 : i64, scratch_operands = 0 : i64, tpu.core_type = #tpu.core_type<tc>, window_params = [{transform_indices = @transform_0, window_bounds = array<i64: 1, 8, 512>}, {pipeline_mode = #tpu.pipeline_mode<synchronous>, transform_indices = @transform_1, window_bounds = array<i64: 9, 8, 8>}, {pipeline_mode = #tpu.pipeline_mode<synchronous>, transform_indices = @transform_2, window_bounds = array<i64: 8, 1>}, {transform_indices = @transform_3, window_bounds = array<i64: 1, 8, 384>}]} {
    %c0 = arith.constant 0 : index
    %c0_0 = arith.constant 0 : index
    %c0_1 = arith.constant 0 : index
    %0 = vector.load %arg1[%c0, %c0_0, %c0_1] : memref<1x8x512xbf16, #tpu.memory_space<vmem>>, vector<1x8x512xbf16>
    %1 = vector.shape_cast %0 : vector<1x8x512xbf16> to vector<8x512xbf16>
    %cst = arith.constant 0.000000e+00 : f32
    %2 = vector.broadcast %cst : f32 to vector<8x384xf32>
    %c0_2 = arith.constant 0 : index
    %c0_3 = arith.constant 0 : index
    %c0_4 = arith.constant 0 : index
    %3 = vector.load %arg2[%c0_2, %c0_3, %c0_4] : memref<9x8x8xbf16, #tpu.memory_space<vmem>>, vector<1x8x8xbf16>
    %4 = vector.shape_cast %3 : vector<1x8x8xbf16> to vector<8x8xbf16>
    %5 = vector.extract_strided_slice %1 {offsets = [0, 0], sizes = [8, 384], strides = [1, 1]} : vector<8x512xbf16> to vector<8x384xbf16>
    %cst_5 = arith.constant dense<0.000000e+00> : vector<8x384xf32>
    %6 = tpu.matmul %4, %5, %cst_5 {dimension_numbers = #tpu.dot_dimension_numbers<[1], [0], [0], [1], [0, 0, 1, 1], [], []>} : vector<8x8xbf16>, vector<8x384xbf16>, vector<8x384xf32> -> vector<8x384xf32>
    %7 = arith.addf %2, %6 : vector<8x384xf32>
    %c1 = arith.constant 1 : index
    %c0_6 = arith.constant 0 : index
    %c0_7 = arith.constant 0 : index
    %8 = vector.load %arg2[%c1, %c0_6, %c0_7] : memref<9x8x8xbf16, #tpu.memory_space<vmem>>, vector<1x8x8xbf16>
    %9 = vector.shape_cast %8 : vector<1x8x8xbf16> to vector<8x8xbf16>
    %10 = vector.extract_strided_slice %1 {offsets = [0, 1], sizes = [8, 384], strides = [1, 1]} : vector<8x512xbf16> to vector<8x384xbf16>
    %cst_8 = arith.constant dense<0.000000e+00> : vector<8x384xf32>
    %11 = tpu.matmul %9, %10, %cst_8 {dimension_numbers = #tpu.dot_dimension_numbers<[1], [0], [0], [1], [0, 0, 1, 1], [], []>} : vector<8x8xbf16>, vector<8x384xbf16>, vector<8x384xf32> -> vector<8x384xf32>
    %12 = arith.addf %7, %11 : vector<8x384xf32>
    %c2 = arith.constant 2 : index
    %c0_9 = arith.constant 0 : index
    %c0_10 = arith.constant 0 : index
    %13 = vector.load %arg2[%c2, %c0_9, %c0_10] : memref<9x8x8xbf16, #tpu.memory_space<vmem>>, vector<1x8x8xbf16>
    %14 = vector.shape_cast %13 : vector<1x8x8xbf16> to vector<8x8xbf16>
    %15 = vector.extract_strided_slice %1 {offsets = [0, 2], sizes = [8, 384], strides = [1, 1]} : vector<8x512xbf16> to vector<8x384xbf16>
    %cst_11 = arith.constant dense<0.000000e+00> : vector<8x384xf32>
    %16 = tpu.matmul %14, %15, %cst_11 {dimension_numbers = #tpu.dot_dimension_numbers<[1], [0], [0], [1], [0, 0, 1, 1], [], []>} : vector<8x8xbf16>, vector<8x384xbf16>, vector<8x384xf32> -> vector<8x384xf32>
    %17 = arith.addf %12, %16 : vector<8x384xf32>
    %c3 = arith.constant 3 : index
    %c0_12 = arith.constant 0 : index
    %c0_13 = arith.constant 0 : index
    %18 = vector.load %arg2[%c3, %c0_12, %c0_13] : memref<9x8x8xbf16, #tpu.memory_space<vmem>>, vector<1x8x8xbf16>
    %19 = vector.shape_cast %18 : vector<1x8x8xbf16> to vector<8x8xbf16>
    %20 = vector.extract_strided_slice %1 {offsets = [0, 18], sizes = [8, 384], strides = [1, 1]} : vector<8x512xbf16> to vector<8x384xbf16>
    %cst_14 = arith.constant dense<0.000000e+00> : vector<8x384xf32>
    %21 = tpu.matmul %19, %20, %cst_14 {dimension_numbers = #tpu.dot_dimension_numbers<[1], [0], [0], [1], [0, 0, 1, 1], [], []>} : vector<8x8xbf16>, vector<8x384xbf16>, vector<8x384xf32> -> vector<8x384xf32>
    %22 = arith.addf %17, %21 : vector<8x384xf32>
    %c4 = arith.constant 4 : index
    %c0_15 = arith.constant 0 : index
    %c0_16 = arith.constant 0 : index
    %23 = vector.load %arg2[%c4, %c0_15, %c0_16] : memref<9x8x8xbf16, #tpu.memory_space<vmem>>, vector<1x8x8xbf16>
    %24 = vector.shape_cast %23 : vector<1x8x8xbf16> to vector<8x8xbf16>
    %25 = vector.extract_strided_slice %1 {offsets = [0, 19], sizes = [8, 384], strides = [1, 1]} : vector<8x512xbf16> to vector<8x384xbf16>
    %cst_17 = arith.constant dense<0.000000e+00> : vector<8x384xf32>
    %26 = tpu.matmul %24, %25, %cst_17 {dimension_numbers = #tpu.dot_dimension_numbers<[1], [0], [0], [1], [0, 0, 1, 1], [], []>} : vector<8x8xbf16>, vector<8x384xbf16>, vector<8x384xf32> -> vector<8x384xf32>
    %27 = arith.addf %22, %26 : vector<8x384xf32>
    %c5 = arith.constant 5 : index
    %c0_18 = arith.constant 0 : index
    %c0_19 = arith.constant 0 : index
    %28 = vector.load %arg2[%c5, %c0_18, %c0_19] : memref<9x8x8xbf16, #tpu.memory_space<vmem>>, vector<1x8x8xbf16>
    %29 = vector.shape_cast %28 : vector<1x8x8xbf16> to vector<8x8xbf16>
    %30 = vector.extract_strided_slice %1 {offsets = [0, 20], sizes = [8, 384], strides = [1, 1]} : vector<8x512xbf16> to vector<8x384xbf16>
    %cst_20 = arith.constant dense<0.000000e+00> : vector<8x384xf32>
    %31 = tpu.matmul %29, %30, %cst_20 {dimension_numbers = #tpu.dot_dimension_numbers<[1], [0], [0], [1], [0, 0, 1, 1], [], []>} : vector<8x8xbf16>, vector<8x384xbf16>, vector<8x384xf32> -> vector<8x384xf32>
    %32 = arith.addf %27, %31 : vector<8x384xf32>
    %c6 = arith.constant 6 : index
    %c0_21 = arith.constant 0 : index
    %c0_22 = arith.constant 0 : index
    %33 = vector.load %arg2[%c6, %c0_21, %c0_22] : memref<9x8x8xbf16, #tpu.memory_space<vmem>>, vector<1x8x8xbf16>
    %34 = vector.shape_cast %33 : vector<1x8x8xbf16> to vector<8x8xbf16>
    %35 = vector.extract_strided_slice %1 {offsets = [0, 36], sizes = [8, 384], strides = [1, 1]} : vector<8x512xbf16> to vector<8x384xbf16>
    %cst_23 = arith.constant dense<0.000000e+00> : vector<8x384xf32>
    %36 = tpu.matmul %34, %35, %cst_23 {dimension_numbers = #tpu.dot_dimension_numbers<[1], [0], [0], [1], [0, 0, 1, 1], [], []>} : vector<8x8xbf16>, vector<8x384xbf16>, vector<8x384xf32> -> vector<8x384xf32>
    %37 = arith.addf %32, %36 : vector<8x384xf32>
    %c7 = arith.constant 7 : index
    %c0_24 = arith.constant 0 : index
    %c0_25 = arith.constant 0 : index
    %38 = vector.load %arg2[%c7, %c0_24, %c0_25] : memref<9x8x8xbf16, #tpu.memory_space<vmem>>, vector<1x8x8xbf16>
    %39 = vector.shape_cast %38 : vector<1x8x8xbf16> to vector<8x8xbf16>
    %40 = vector.extract_strided_slice %1 {offsets = [0, 37], sizes = [8, 384], strides = [1, 1]} : vector<8x512xbf16> to vector<8x384xbf16>
    %cst_26 = arith.constant dense<0.000000e+00> : vector<8x384xf32>
    %41 = tpu.matmul %39, %40, %cst_26 {dimension_numbers = #tpu.dot_dimension_numbers<[1], [0], [0], [1], [0, 0, 1, 1], [], []>} : vector<8x8xbf16>, vector<8x384xbf16>, vector<8x384xf32> -> vector<8x384xf32>
    %42 = arith.addf %37, %41 : vector<8x384xf32>
    %c8 = arith.constant 8 : index
    %c0_27 = arith.constant 0 : index
    %c0_28 = arith.constant 0 : index
    %43 = vector.load %arg2[%c8, %c0_27, %c0_28] : memref<9x8x8xbf16, #tpu.memory_space<vmem>>, vector<1x8x8xbf16>
    %44 = vector.shape_cast %43 : vector<1x8x8xbf16> to vector<8x8xbf16>
    %45 = vector.extract_strided_slice %1 {offsets = [0, 38], sizes = [8, 384], strides = [1, 1]} : vector<8x512xbf16> to vector<8x384xbf16>
    %cst_29 = arith.constant dense<0.000000e+00> : vector<8x384xf32>
    %46 = tpu.matmul %44, %45, %cst_29 {dimension_numbers = #tpu.dot_dimension_numbers<[1], [0], [0], [1], [0, 0, 1, 1], [], []>} : vector<8x8xbf16>, vector<8x384xbf16>, vector<8x384xf32> -> vector<8x384xf32>
    %47 = arith.addf %42, %46 : vector<8x384xf32>
    %c0_30 = arith.constant 0 : index
    %c0_31 = arith.constant 0 : index
    %48 = vector.load %arg3[%c0_30, %c0_31] : memref<8x1xf32, #tpu.memory_space<vmem>>, vector<8x1xf32>
    %49 = vector.broadcast %48 : vector<8x1xf32> to vector<8x384xf32>
    %50 = arith.addf %47, %49 : vector<8x384xf32>
    %cst_32 = arith.constant 2.000000e-01 : f32
    %51 = vector.broadcast %cst_32 : f32 to vector<8x384xf32>
    %52 = arith.mulf %51, %50 : vector<8x384xf32>
    %53 = arith.maximumf %50, %52 : vector<8x384xf32>
    %c0_33 = arith.constant 0 : index
    %c0_34 = arith.constant 0 : index
    %c0_35 = arith.constant 0 : index
    %54 = vector.load %arg4[%c0_33, %c0_34, %c0_35] : memref<1x8x384xf32, #tpu.memory_space<vmem>>, vector<1x8x384xf32>
    %55 = vector.shape_cast %54 : vector<1x8x384xf32> to vector<8x384xf32>
    %56 = vector.shape_cast %53 : vector<8x384xf32> to vector<1x8x384xf32>
    tpu.vector_store %arg4[%c0_33, %c0_34, %c0_35], %56 {strides = array<i32>} : memref<1x8x384xf32, #tpu.memory_space<vmem>>, vector<1x8x384xf32>,
    return
  }
  func.func @transform_0(%arg0: i32) -> (i32, i32, i32) {
    %c0_i32 = arith.constant 0 : i32
    %c0_i32_0 = arith.constant 0 : i32
    %c0_i32_1 = arith.constant 0 : i32
    return %arg0, %c0_i32, %c0_i32_0 : i32, i32, i32
  }
  func.func @transform_1(%arg0: i32) -> (i32, i32, i32) {
    %c0_i32 = arith.constant 0 : i32
    %c0_i32_0 = arith.constant 0 : i32
    %c0_i32_1 = arith.constant 0 : i32
    %c0_i32_2 = arith.constant 0 : i32
    return %c0_i32, %c0_i32_0, %c0_i32_1 : i32, i32, i32
  }
  func.func @transform_2(%arg0: i32) -> (i32, i32) {
    %c0_i32 = arith.constant 0 : i32
    %c0_i32_0 = arith.constant 0 : i32
    %c0_i32_1 = arith.constant 0 : i32
    return %c0_i32, %c0_i32_0 : i32, i32
  }
  func.func @transform_3(%arg0: i32) -> (i32, i32, i32) {
    %c0_i32 = arith.constant 0 : i32
    %c0_i32_0 = arith.constant 0 : i32
    %c0_i32_1 = arith.constant 0 : i32
    return %arg0, %c0_i32, %c0_i32_0 : i32, i32, i32
  }
}

</mosaic_0001>

<bundles_post_ra>
// kernel: block_forward.1
= control target key start
LH: loop header
LB: loop body
LE: loop exit
PB: predicated region body
PF: predicated region fallthrough
CT: control target
= control target key end

     0   :  { %s1416_s12 = smov 0   ;;  %s1571_s0 = inlined_call_operand.vmem [shape: bf16[2,8,512], index: 0, kind: input, shape index: {}]   ;;  %s1572_s1 = inlined_call_operand.vmem [shape: bf16[9,8,8], index: 1, kind: input, shape index: {}]   ;;  %s1573_s2 = inlined_call_operand.vmem [shape: f32[8,1], index: 2, kind: input, shape index: {}]   ;;  %s1574_s3 = inlined_call_operand.vmem [shape: f32[2,8,384], index: 3, kind: output, shape index: {}]  }
   0x1 LB: > { %s1230_s13 = sadd.s32 4294967295, %s1383_s12   ;;  %p1234_p0 = scmp.ge.s32.totalorder %s1383_s12, 1  ;;  %s1383_s12 = sphi %s1416_s12, %s13_s12  }
   0x2   : > { %p137_p1 = scmp.lt.s32.totalorder %s1383_s12, 3 }
   0x4   : > { %p138_p2 = pnand %p1234_p0, %p137_p1 }
   0x5   : > { %p161_p3 = scmp.lt.s32.totalorder (!%p138_p2), %s1230_s13, 1  ;;  %v1385_v0 = vmov (!%p138_p2), 0.0   ;;  %v1386_v1 = vmov (!%p138_p2), 0   ;;  %vm1387_vm0 = vmmov (!%p138_p2), 0   ;;  %s1388_s18 = smov (!%p138_p2), 127   ;;  %v1157_v8 = vld [vmem:[%s1573_s2] sm:$0xff] (!%p138_p2) }
   0x6   : > { %141 = sbr.rel (%p138_p2) target bundleno = 429 (0x1ad), region = 32  ;;  %1298 = vmatprep.subr.bf16.mxu1 (!%p138_p2), %v1385_v0  ;;  %245 = vmatprep.mubr.bf16.mxu0 (!%p138_p2), %v1386_v1  ;;  %s1389_s19 = smov (!%p138_p2), 126   ;;  %vm195_vm1 = vcmask (!%p138_p2), 1039360   ;;  %vm203_vm2 = vcmask (!%p138_p2), 1043456   ;;  %v1238_v18 = vld [vmem:[%s1572_s1 + $0x4] sm:$0xf] (!%p138_p2) }
   0x7   : > { %1300 = vmatprep.mubr.msk.bf16.mxu1 (!%p138_p2), %vm1387_vm0, %v1385_v0  ;;  %1372 = vset.pattern.permute.xlu0 (!%p138_p2), %v1386_v1  ;;  %s1390_s20 = smov (!%p138_p2), 110   ;;  %s1391_s21 = smov (!%p138_p2), 109   ;;  %vm199_vm3 = vcmask (!%p138_p2), 64512   ;;  %vm397_vm4 = vcmask (!%p138_p2), 1031168   ;;  %v174_v28 = vld [vmem:[%s1572_s1] sm:$0xf] (!%p138_p2) }
   0x8   : > { %s1392_s22 = smov (!%p138_p2), 108   ;;  %s1393_s23 = smov (!%p138_p2), 92   ;;  %vm507_vm5 = vcmask (!%p138_p2), 900096   ;;  %v1249_v38 = vld [vmem:[%s1572_s1 + $0x8] sm:$0xf] (!%p138_p2)  ;;  %vm617_vm6 = vcmask (!%p138_p2), 891904  }
   0x9   : > { %s1394_s24 = smov (!%p138_p2), 91   ;;  %s1395_s25 = smov (!%p138_p2), 90   ;;  %v1253_v48 = vld [vmem:[%s1572_s1 + $0xc] sm:$0xf] (!%p138_p2)  ;;  %vm727_vm7 = vcmask (!%p138_p2), 883712   ;;  %vm837_vm8 = vcmask (!%p138_p2), 752640  }
   0xa   : > { %v1257_v58 = vld [vmem:[%s1572_s1 + $0x10] sm:$0xf] (!%p138_p2)  ;;  %vm947_vm9 = vcmask (!%p138_p2), 744448   ;;  %vm1057_vm10 = vcmask (!%p138_p2), 736256  }
   0xd   : > { %s1576_s13 = smov (!%p161_p3, %s1230_s13), 1 }
   0xe   : > { %s1279_s14 = sshll.u32 %s1576_s13, 4 }
   0xf   : > { %s165_s17 = scalar_lea.vmem %s1571_s0, %s1279_s14 }
  0x10   : > { %v173_v2 = vld [vmem:[%s165_s17 + $0x8] sm:$0xff]  ;;  %v172_v3 = vld [vmem:[%s165_s17] sm:$0xff] }
  0x11   : > { %v1435_v4 = vcombine.low %v173_v2, %v173_v2  ;;  %v1437_v5 = vcombine.low %v172_v3, %v172_v3  ;;  %v1242_v6 = vcombine.high %v173_v2, %v173_v2  ;;  %v1240_v7 = vcombine.high %v172_v3, %v172_v3 }
  0x13   : > { %191 = vrot.lane.b32.xlu1 %v1435_v4, %s1388_s18  ;;  %187 = vrot.lane.b32.xlu0 %v1437_v5, %s1388_s18  ;;  %v298_v20 = vsel %vm203_vm2, %v1437_v5, 0  ;;  %v304_v21 = vsel %vm203_vm2, %v1435_v4, 0 }
  0x17   : > { %193 = vrot.lane.b32.xlu1 %v1242_v6, %s1388_s18  ;;  %189 = vrot.lane.b32.xlu0 %v1240_v7, %s1388_s18 }
  0x1b   : > { %389 = vrot.lane.b32.xlu0 %v1437_v5, %s1389_s19  ;;  %391 = vrot.lane.b32.xlu1 %v1240_v7, %s1389_s19 }
  0x1f   : > { %393 = vrot.lane.b32.xlu0 %v1435_v4, %s1389_s19  ;;  %395 = vrot.lane.b32.xlu1 %v1242_v6, %s1389_s19 }
  0x23   : > { %499 = vrot.lane.b32.xlu0 %v1437_v5, %s1390_s20  ;;  %501 = vrot.lane.b32.xlu1 %v1240_v7, %s1390_s20 }
  0x27   : > { %503 = vrot.lane.b32.xlu0 %v1435_v4, %s1390_s20  ;;  %505 = vrot.lane.b32.xlu1 %v1242_v6, %s1390_s20 }
  0x2b   : > { %609 = vrot.lane.b32.xlu0 %v1437_v5, %s1391_s21  ;;  %611 = vrot.lane.b32.xlu1 %v1240_v7, %s1391_s21 }
  0x2f   : > { %613 = vrot.lane.b32.xlu0 %v1435_v4, %s1391_s21  ;;  %615 = vrot.lane.b32.xlu1 %v1242_v6, %s1391_s21  ;;  %s1352_s21 = smul.u32 24, %s1576_s13 }
  0x33   : > { %719 = vrot.lane.b32.xlu0 %v1437_v5, %s1392_s22  ;;  %721 = vrot.lane.b32.xlu1 %v1240_v7, %s1392_s22 }
  0x37   : > { %723 = vrot.lane.b32.xlu0 %v1435_v4, %s1392_s22  ;;  %725 = vrot.lane.b32.xlu1 %v1242_v6, %s1392_s22 }
  0x3b   : > { %829 = vrot.lane.b32.xlu0 %v1437_v5, %s1393_s23  ;;  %831 = vrot.lane.b32.xlu1 %v1240_v7, %s1393_s23 }
  0x3f   : > { %833 = vrot.lane.b32.xlu0 %v1435_v4, %s1393_s23  ;;  %835 = vrot.lane.b32.xlu1 %v1242_v6, %s1393_s23 }
  0x43   : > { %939 = vrot.lane.b32.xlu0 %v1437_v5, %s1394_s24  ;;  %941 = vrot.lane.b32.xlu1 %v1240_v7, %s1394_s24 }
  0x47   : > { %943 = vrot.lane.b32.xlu0 %v1435_v4, %s1394_s24  ;;  %945 = vrot.lane.b32.xlu1 %v1242_v6, %s1394_s24  ;;  %s170_s24 = scalar_lea.vmem %s1574_s3, %s1352_s21 }
  0x4b   : > { %1049 = vrot.lane.b32.xlu0 %v1437_v5, %s1395_s25  ;;  %1051 = vrot.lane.b32.xlu1 %v1240_v7, %s1395_s25 }
  0x4f   : > { %1053 = vrot.lane.b32.xlu0 %v1435_v4, %s1395_s25  ;;  %1055 = vrot.lane.b32.xlu1 %v1242_v6, %s1395_s25  ;;  %v1261_v6 = vld [vmem:[%s1572_s1 + $0x14] sm:$0xf] }
  0x53   : > { %1160 = vperm.xlu0 %1372, %v1157_v8  }
  0x85   : > { %v192_v9 = vpop.permute.xlu1 %191  ;;  %v188_v10 = vpop.permute.xlu0 %187 }
  0x89   : > { %v194_v11 = vpop.permute.xlu1 %193  ;;  %v190_v12 = vpop.permute.xlu0 %189 }
  0x8a   : > { %v197_v13 = vsel %vm195_vm1, %v190_v12, %v192_v9  ;;  %v196_v14 = vsel %vm195_vm1, %v188_v10, %v190_v12  ;;  %v198_v15 = vsel %vm195_vm1, %v192_v9, %v194_v11 }
  0x8b   : > { %1243 = vmatprep.subr.msk.bf16.mxu0 %vm203_vm2, %v197_v13  ;;  %v205_v16 = vsel %vm203_vm2, %v196_v14, 0  ;;  %v211_v17 = vsel %vm203_vm2, %v198_v15, 0 }
  0x8c   : > { %214 = vmatpush1.bf16.msra.mxu0 %v205_v16  ;;  %1299 = vmatpush3.bf16.msra.mxu1 %v211_v17  ;;  %v1265_v16 = vld [vmem:[%s1572_s1 + $0x18] sm:$0xf] }
  0x8d   : > { %v390_v19 = vpop.permute.xlu0 %389  ;;  %1246 = vmatprep.subr.msk.bf16.mxu0 %vm203_vm2, %v1240_v7  ;;  %1304 = vmatprep.subr.bf16.mxu1 %v1385_v0  ;;  %v392_v22 = vpop.permute.xlu1 %391 }
  0x8e   : > { %v398_v25 = vsel %vm397_vm4, %v390_v19, %v392_v22 }
  0x8f   : > { %1244 = vmatmul.mubr.msk.bf16.vlgmr.msra.gmra.mrb[0].mxu0 %vm199_vm3, %v1238_v18  ;;  %1301 = vmatmul.mubr.msk.bf16.vlgmr.msra.gmra.mrb[0].mxu1 %vm199_vm3, %v1238_v18  ;;  %v405_v29 = vsel %vm203_vm2, %v398_v25, 0 }
  0x90   : > { %307 = vmatpush1.bf16.msra.mxu0 %v298_v20  ;;  %1305 = vmatpush3.bf16.msra.mxu1 %v304_v21 }
  0x91   : > { %v394_v23 = vpop.permute.xlu0 %393  ;;  %v396_v24 = vpop.permute.xlu1 %395  ;;  %338 = vmatprep.mubr.bf16.mxu0 %v1386_v1  ;;  %1306 = vmatprep.mubr.msk.bf16.mxu1 %vm1387_vm0, %v1385_v0 }
  0x92   : > { %v399_v26 = vsel %vm397_vm4, %v392_v22, %v394_v23  ;;  %v400_v27 = vsel %vm397_vm4, %v394_v23, %v396_v24  ;;  %1310 = vmatprep.subr.bf16.mxu1 %v1385_v0 }
  0x93   : > { %1250 = vmatprep.subr.msk.bf16.mxu0 %vm203_vm2, %v399_v26  ;;  %v411_v30 = vsel %vm203_vm2, %v400_v27, 0  ;;  %v1269_v26 = vld [vmem:[%s1572_s1 + $0x1c] sm:$0xf] }
  0x95   : > { %v500_v31 = vpop.permute.xlu0 %499  ;;  %v502_v32 = vpop.permute.xlu1 %501 }
  0x96   : > { %v508_v35 = vsel %vm507_vm5, %v500_v31, %v502_v32 }
  0x97   : > { %1247 = vmatmul.mubr.msk.bf16.vlgmr.msra.gmra.mrb[4].mxu0 %vm199_vm3, %v174_v28  ;;  %1307 = vmatmul.mubr.msk.bf16.vlgmr.msra.gmra.mrb[4].mxu1 %vm199_vm3, %v174_v28  ;;  %v515_v39 = vsel %vm203_vm2, %v508_v35, 0 }
  0x98   : > { %414 = vmatpush1.bf16.msra.mxu0 %v405_v29  ;;  %1311 = vmatpush3.bf16.msra.mxu1 %v411_v30  ;;  %v1273_v29 = vld [vmem:[%s1572_s1 + $0x20] sm:$0xf] }
  0x99   : > { %v504_v33 = vpop.permute.xlu0 %503  ;;  %v506_v34 = vpop.permute.xlu1 %505  ;;  %1312 = vmatprep.mubr.msk.bf16.mxu1 %vm1387_vm0, %v1385_v0  ;;  %445 = vmatprep.mubr.bf16.mxu0 %v1386_v1 }
  0x9a   : > { %v509_v36 = vsel %vm507_vm5, %v502_v32, %v504_v33  ;;  %v510_v37 = vsel %vm507_vm5, %v504_v33, %v506_v34  ;;  %1316 = vmatprep.subr.bf16.mxu1 %v1385_v0 }
  0x9b   : > { %1254 = vmatprep.subr.msk.bf16.mxu0 %vm203_vm2, %v509_v36  ;;  %v521_v40 = vsel %vm203_vm2, %v510_v37, 0 }
  0x9d   : > { %v610_v41 = vpop.permute.xlu0 %609  ;;  %v612_v42 = vpop.permute.xlu1 %611 }
  0x9e   : > { %v618_v45 = vsel %vm617_vm6, %v610_v41, %v612_v42 }
  0x9f   : > { %1251 = vmatmul.mubr.msk.bf16.vlgmr.msra.gmra.mrb[8].mxu0 %vm199_vm3, %v1249_v38  ;;  %1313 = vmatmul.mubr.msk.bf16.vlgmr.msra.gmra.mrb[8].mxu1 %vm199_vm3, %v1249_v38  ;;  %v625_v49 = vsel %vm203_vm2, %v618_v45, 0 }
  0xa0   : > { %524 = vmatpush1.bf16.msra.mxu0 %v515_v39  ;;  %1317 = vmatpush3.bf16.msra.mxu1 %v521_v40 }
  0xa1   : > { %v614_v43 = vpop.permute.xlu0 %613  ;;  %v616_v44 = vpop.permute.xlu1 %615  ;;  %1318 = vmatprep.mubr.msk.bf16.mxu1 %vm1387_vm0, %v1385_v0  ;;  %555 = vmatprep.mubr.bf16.mxu0 %v1386_v1 }
  0xa2   : > { %v619_v46 = vsel %vm617_vm6, %v612_v42, %v614_v43  ;;  %v620_v47 = vsel %vm617_vm6, %v614_v43, %v616_v44  ;;  %1322 = vmatprep.subr.bf16.mxu1 %v1385_v0 }
  0xa3   : > { %1258 = vmatprep.subr.msk.bf16.mxu0 %vm203_vm2, %v619_v46  ;;  %v631_v50 = vsel %vm203_vm2, %v620_v47, 0 }
  0xa5   : > { %v720_v51 = vpop.permute.xlu0 %719  ;;  %v722_v52 = vpop.permute.xlu1 %721 }
  0xa6   : > { %v728_v55 = vsel %vm727_vm7, %v720_v51, %v722_v52 }
  0xa7   : > { %1255 = vmatmul.mubr.msk.bf16.vlgmr.msra.gmra.mrb[12].mxu0 %vm199_vm3, %v1253_v48  ;;  %1319 = vmatmul.mubr.msk.bf16.vlgmr.msra.gmra.mrb[12].mxu1 %vm199_vm3, %v1253_v48  ;;  %v735_v59 = vsel %vm203_vm2, %v728_v55, 0 }
  0xa8   : > { %634 = vmatpush1.bf16.msra.mxu0 %v625_v49  ;;  %1323 = vmatpush3.bf16.msra.mxu1 %v631_v50 }
  0xa9   : > { %v724_v53 = vpop.permute.xlu0 %723  ;;  %v726_v54 = vpop.permute.xlu1 %725  ;;  %1324 = vmatprep.mubr.msk.bf16.mxu1 %vm1387_vm0, %v1385_v0  ;;  %665 = vmatprep.mubr.bf16.mxu0 %v1386_v1 }
  0xaa   : > { %v729_v56 = vsel %vm727_vm7, %v722_v52, %v724_v53  ;;  %v730_v57 = vsel %vm727_vm7, %v724_v53, %v726_v54  ;;  %1328 = vmatprep.subr.bf16.mxu1 %v1385_v0 }
  0xab   : > { %1262 = vmatprep.subr.msk.bf16.mxu0 %vm203_vm2, %v729_v56  ;;  %v741_v60 = vsel %vm203_vm2, %v730_v57, 0 }
  0xad   : > { %v830_v61 = vpop.permute.xlu0 %829  ;;  %v832_v62 = vpop.permute.xlu1 %831 }
  0xae   : > { %v838_v3 = vsel %vm837_vm8, %v830_v61, %v832_v62 }
  0xaf   : > { %1259 = vmatmul.mubr.msk.bf16.vlgmr.msra.gmra.mrb[16].mxu0 %vm199_vm3, %v1257_v58  ;;  %1325 = vmatmul.mubr.msk.bf16.vlgmr.msra.gmra.mrb[16].mxu1 %vm199_vm3, %v1257_v58  ;;  %v845_v7 = vsel %vm203_vm2, %v838_v3, 0 }
  0xb0   : > { %744 = vmatpush1.bf16.msra.mxu0 %v735_v59  ;;  %1329 = vmatpush3.bf16.msra.mxu1 %v741_v60 }
  0xb1   : > { %v834_v63 = vpop.permute.xlu0 %833  ;;  %v836_v2 = vpop.permute.xlu1 %835  ;;  %1330 = vmatprep.mubr.msk.bf16.mxu1 %vm1387_vm0, %v1385_v0  ;;  %775 = vmatprep.mubr.bf16.mxu0 %v1386_v1 }
  0xb2   : > { %v839_v4 = vsel %vm837_vm8, %v832_v62, %v834_v63  ;;  %v840_v5 = vsel %vm837_vm8, %v834_v63, %v836_v2  ;;  %1334 = vmatprep.subr.bf16.mxu1 %v1385_v0 }
  0xb3   : > { %1266 = vmatprep.subr.msk.bf16.mxu0 %vm203_vm2, %v839_v4  ;;  %v851_v8 = vsel %vm203_vm2, %v840_v5, 0 }
  0xb5   : > { %v940_v9 = vpop.permute.xlu0 %939  ;;  %v942_v10 = vpop.permute.xlu1 %941 }
  0xb6   : > { %v948_v13 = vsel %vm947_vm9, %v940_v9, %v942_v10 }
  0xb7   : > { %1263 = vmatmul.mubr.msk.bf16.vlgmr.msra.gmra.mrb[20].mxu0 %vm199_vm3, %v1261_v6  ;;  %1331 = vmatmul.mubr.msk.bf16.vlgmr.msra.gmra.mrb[20].mxu1 %vm199_vm3, %v1261_v6  ;;  %v955_v17 = vsel %vm203_vm2, %v948_v13, 0 }
  0xb8   : > { %854 = vmatpush1.bf16.msra.mxu0 %v845_v7  ;;  %1335 = vmatpush3.bf16.msra.mxu1 %v851_v8 }
  0xb9   : > { %v944_v11 = vpop.permute.xlu0 %943  ;;  %v946_v12 = vpop.permute.xlu1 %945  ;;  %1336 = vmatprep.mubr.msk.bf16.mxu1 %vm1387_vm0, %v1385_v0  ;;  %885 = vmatprep.mubr.bf16.mxu0 %v1386_v1 }
  0xba   : > { %v949_v14 = vsel %vm947_vm9, %v942_v10, %v944_v11  ;;  %v950_v15 = vsel %vm947_vm9, %v944_v11, %v946_v12  ;;  %1340 = vmatprep.subr.bf16.mxu1 %v1385_v0 }
  0xbb   : > { %1270 = vmatprep.subr.msk.bf16.mxu0 %vm203_vm2, %v949_v14  ;;  %v961_v18 = vsel %vm203_vm2, %v950_v15, 0 }
  0xbd   : > { %v1050_v19 = vpop.permute.xlu0 %1049  ;;  %v1052_v20 = vpop.permute.xlu1 %1051 }
  0xbe   : > { %v1058_v23 = vsel %vm1057_vm10, %v1050_v19, %v1052_v20 }
  0xbf   : > { %1267 = vmatmul.mubr.msk.bf16.vlgmr.msra.gmra.mrb[24].mxu0 %vm199_vm3, %v1265_v16  ;;  %1337 = vmatmul.mubr.msk.bf16.vlgmr.msra.gmra.mrb[24].mxu1 %vm199_vm3, %v1265_v16  ;;  %v1065_v27 = vsel %vm203_vm2, %v1058_v23, 0 }
  0xc0   : > { %964 = vmatpush1.bf16.msra.mxu0 %v955_v17  ;;  %1341 = vmatpush3.bf16.msra.mxu1 %v961_v18 }
  0xc1   : > { %v1054_v21 = vpop.permute.xlu0 %1053  ;;  %v1056_v22 = vpop.permute.xlu1 %1055  ;;  %995 = vmatprep.mubr.bf16.mxu0 %v1386_v1  ;;  %1342 = vmatprep.mubr.msk.bf16.mxu1 %vm1387_vm0, %v1385_v0 }
  0xc2   : > { %v1059_v24 = vsel %vm1057_vm10, %v1052_v20, %v1054_v21  ;;  %v1060_v25 = vsel %vm1057_vm10, %v1054_v21, %v1056_v22  ;;  %1346 = vmatprep.subr.bf16.mxu1 %v1385_v0 }
  0xc3   : > { %1274 = vmatprep.subr.msk.bf16.mxu0 %vm203_vm2, %v1059_v24  ;;  %v1071_v28 = vsel %vm203_vm2, %v1060_v25, 0 }
  0xc7   : > { %1271 = vmatmul.mubr.msk.bf16.vlgmr.msra.gmra.mrb[28].mxu0 %vm199_vm3, %v1269_v26  ;;  %1343 = vmatmul.mubr.msk.bf16.vlgmr.msra.gmra.mrb[28].mxu1 %vm199_vm3, %v1269_v26 }
  0xc8   : > { %1074 = vmatpush1.bf16.msra.mxu0 %v1065_v27  ;;  %1347 = vmatpush3.bf16.msra.mxu1 %v1071_v28 }
  0xc9   : > { %1105 = vmatprep.mubr.bf16.mxu0 %v1386_v1  ;;  %1348 = vmatprep.mubr.msk.bf16.mxu1 %vm1387_vm0, %v1385_v0 }
  0xcf   : > { %1275 = vmatmul.mubr.msk.bf16.vlgmr.msra.gmra.mrb[32].mxu0 %vm199_vm3, %v1273_v29  ;;  %1349 = vmatmul.mubr.msk.bf16.vlgmr.msra.gmra.mrb[32].mxu1 %vm199_vm3, %v1273_v29 }
 0x162   : > { %v247_v30 = vpop.f32.mrb[0].mxu0  ;;  %v288_v31 = vpop.f32.mrb[0].mxu1 }
 0x163   : > { %v249_v32 = vpop.f32.mrb[1].mxu0  ;;  %v1302_v33 = vpop.f32.mrb[1].mxu1 }
 0x164   : > { %v251_v34 = vpop.f32.mrb[2].mxu0  ;;  %v291_v35 = vpop.f32.mrb[2].mxu1 }
 0x165   : > { %v252_v36 = vpop.f32.mrb[3].mxu0  ;;  %v1303_v37 = vpop.f32.mrb[3].mxu1 }
 0x16a   : > { %v340_v1 = vpop.f32.mrb[4].mxu0  ;;  %v381_v38 = vpop.f32.mrb[4].mxu1 }
 0x16b   : > { %v341_v39 = vadd.f32 %v340_v1, %v247_v30  ;;  %v382_v0 = vadd.f32 %v381_v38, %v288_v31  ;;  %v342_v40 = vpop.f32.mrb[5].mxu0  ;;  %v1308_v41 = vpop.f32.mrb[5].mxu1 }
 0x16c   : > { %v343_v42 = vadd.f32 %v342_v40, %v249_v32  ;;  %v344_v43 = vpop.f32.mrb[6].mxu0  ;;  %v384_v44 = vpop.f32.mrb[6].mxu1 }
 0x16d   : > { %v345_v45 = vpop.f32.mrb[7].mxu0  ;;  %v1309_v46 = vpop.f32.mrb[7].mxu1 }
 0x172   : > { %v447_v47 = vpop.f32.mrb[8].mxu0  ;;  %v488_v48 = vpop.f32.mrb[8].mxu1 }
 0x173   : > { %v494_v49 = vadd.f32 %v447_v47, %v341_v39  ;;  %v496_v50 = vadd.f32 %v488_v48, %v382_v0  ;;  %v449_v51 = vpop.f32.mrb[9].mxu0  ;;  %v1314_v52 = vpop.f32.mrb[9].mxu1 }
 0x174   : > { %v495_v53 = vadd.f32 %v449_v51, %v343_v42  ;;  %v451_v54 = vpop.f32.mrb[10].mxu0  ;;  %v491_v55 = vpop.f32.mrb[10].mxu1 }
 0x175   : > { %v452_v56 = vpop.f32.mrb[11].mxu0  ;;  %v1315_v57 = vpop.f32.mrb[11].mxu1 }
 0x17a   : > { %v557_v58 = vpop.f32.mrb[12].mxu0  ;;  %v598_v59 = vpop.f32.mrb[12].mxu1 }
 0x17b   : > { %v604_v60 = vadd.f32 %v557_v58, %v494_v49  ;;  %v606_v61 = vadd.f32 %v598_v59, %v496_v50  ;;  %v559_v62 = vpop.f32.mrb[13].mxu0  ;;  %v1320_v63 = vpop.f32.mrb[13].mxu1 }
 0x17c   : > { %v605_v2 = vadd.f32 %v559_v62, %v495_v53  ;;  %v561_v3 = vpop.f32.mrb[14].mxu0  ;;  %v601_v4 = vpop.f32.mrb[14].mxu1 }
 0x17d   : > { %v562_v5 = vpop.f32.mrb[15].mxu0  ;;  %v1321_v6 = vpop.f32.mrb[15].mxu1 }
 0x17e   : > { %v1161_v49 = vpop.permute.xlu0 %1160 }
 0x182   : > { %v667_v7 = vpop.f32.mrb[16].mxu0  ;;  %v708_v8 = vpop.f32.mrb[16].mxu1 }
 0x183   : > { %v714_v9 = vadd.f32 %v667_v7, %v604_v60  ;;  %v716_v10 = vadd.f32 %v708_v8, %v606_v61  ;;  %v669_v11 = vpop.f32.mrb[17].mxu0  ;;  %v1326_v12 = vpop.f32.mrb[17].mxu1 }
 0x184   : > { %v715_v13 = vadd.f32 %v669_v11, %v605_v2  ;;  %v671_v14 = vpop.f32.mrb[18].mxu0  ;;  %v711_v15 = vpop.f32.mrb[18].mxu1 }
 0x185   : > { %v672_v16 = vpop.f32.mrb[19].mxu0  ;;  %v1327_v17 = vpop.f32.mrb[19].mxu1 }
 0x18a   : > { %v777_v18 = vpop.f32.mrb[20].mxu0  ;;  %v818_v19 = vpop.f32.mrb[20].mxu1 }
 0x18b   : > { %v824_v20 = vadd.f32 %v777_v18, %v714_v9  ;;  %v826_v21 = vadd.f32 %v818_v19, %v716_v10  ;;  %v779_v22 = vpop.f32.mrb[21].mxu0  ;;  %v1332_v23 = vpop.f32.mrb[21].mxu1 }
 0x18c   : > { %v825_v24 = vadd.f32 %v779_v22, %v715_v13  ;;  %v781_v25 = vpop.f32.mrb[22].mxu0  ;;  %v821_v26 = vpop.f32.mrb[22].mxu1 }
 0x18d   : > { %v782_v27 = vpop.f32.mrb[23].mxu0  ;;  %v1333_v28 = vpop.f32.mrb[23].mxu1 }
 0x192   : > { %v887_v29 = vpop.f32.mrb[24].mxu0  ;;  %v928_v30 = vpop.f32.mrb[24].mxu1 }
 0x193   : > { %v934_v31 = vadd.f32 %v887_v29, %v824_v20  ;;  %v936_v32 = vadd.f32 %v928_v30, %v826_v21  ;;  %v889_v33 = vpop.f32.mrb[25].mxu0  ;;  %v1338_v34 = vpop.f32.mrb[25].mxu1 }
 0x194   : > { %v935_v35 = vadd.f32 %v889_v33, %v825_v24  ;;  %v891_v36 = vpop.f32.mrb[26].mxu0  ;;  %v931_v37 = vpop.f32.mrb[26].mxu1 }
 0x195   : > { %v892_v1 = vpop.f32.mrb[27].mxu0  ;;  %v1339_v38 = vpop.f32.mrb[27].mxu1 }
 0x19a   : > { %v997_v39 = vpop.f32.mrb[28].mxu0  ;;  %v1038_v0 = vpop.f32.mrb[28].mxu1 }
 0x19b   : > { %v1044_v40 = vadd.f32 %v997_v39, %v934_v31  ;;  %v1046_v41 = vadd.f32 %v1038_v0, %v936_v32  ;;  %v999_v42 = vpop.f32.mrb[29].mxu0  ;;  %v1344_v43 = vpop.f32.mrb[29].mxu1 }
 0x19c   : > { %v1045_v44 = vadd.f32 %v999_v42, %v935_v35  ;;  %v1001_v45 = vpop.f32.mrb[30].mxu0  ;;  %v1041_v46 = vpop.f32.mrb[30].mxu1 }
 0x19d   : > { %v1002_v47 = vpop.f32.mrb[31].mxu0  ;;  %v1345_v48 = vpop.f32.mrb[31].mxu1 }
 0x1a2   : > { %v1107_v50 = vpop.f32.mrb[32].mxu0  ;;  %v1148_v51 = vpop.f32.mrb[32].mxu1 }
 0x1a3   : > { %v1154_v52 = vadd.f32 %v1107_v50, %v1044_v40  ;;  %v1156_v53 = vadd.f32 %v1148_v51, %v1046_v41  ;;  %v1109_v54 = vpop.f32.mrb[33].mxu0  ;;  %v1350_v55 = vpop.f32.mrb[33].mxu1 }
 0x1a4   : > { %v1155_v56 = vadd.f32 %v1109_v54, %v1045_v44  ;;  %v1151_v57 = vpop.f32.mrb[34].mxu1  ;;  %v1111_v58 = vpop.f32.mrb[34].mxu0 }
 0x1a5   : > { %v1163_v59 = vadd.f32 %v1161_v49, %v1154_v52  ;;  %v1165_v60 = vadd.f32 %v1161_v49, %v1156_v53  ;;  %v1112_v61 = vpop.f32.mrb[35].mxu0  ;;  %v1351_v62 = vpop.f32.mrb[35].mxu1 }
 0x1a6   : > { %v1164_v63 = vadd.f32 %v1161_v49, %v1155_v56 }
 0x1a7   : > { %v1166_v2 = vmul.f32 0.2, %v1163_v59  ;;  %v1168_v3 = vmul.f32 0.2, %v1165_v60 }
 0x1a8   : > { %v1167_v4 = vmul.f32 0.2, %v1164_v63 }
 0x1a9   : > { %v1169_v5 = vmax.f32 %v1163_v59, %v1166_v2  ;;  %v1171_v6 = vmax.f32 %v1165_v60, %v1168_v3 }
 0x1aa   : > { %v1170_v7 = vmax.f32 %v1164_v63, %v1167_v4 }
 0x1ab   : > { %1172 = vst [vmem:[%s170_s24] sm:$0xff] %v1169_v5  ;;  %1174 = vst [vmem:[%s170_s24 + $0x10] sm:$0xff] %v1171_v6 }
 0x1ac   : > { %1173 = vst [vmem:[%s170_s24 + $0x8] sm:$0xff] %v1170_v7 }
 0x1ad PF: > { %s13_s12 = sadd.s32 1, %s1383_s12  }
 0x1ae   : > { %p10_p4 = scmp.ge.s32.totalorder %s13_s12, 4  }
 0x1b0   :  { %12 = sbr.rel (!%p10_p4) target bundleno = 1 (0x1), region = 70 }

</bundles_post_ra>
